<compile_context>
chip_gen: v7x
topology: tpu7x:2x2x1
jax: 0.10.0
libtpu: 0.0.40
codegen_flags: <defaults>
</compile_context>

<pallas_src>
import functools

import jax
import jax.numpy as jnp
from jax.experimental import pallas as pl
from jax.experimental.pallas import tpu as pltpu

_LANES = 128
_NUM_BITS = 8
_BOUND = float(2 ** (_NUM_BITS - 1) - 1)   # 127
_QMIN = -float(2 ** (_NUM_BITS - 1))       # -128 (narrow_range=False)
_QMAX = _BOUND                             # 127

# ~2 MiB per f32 pipeline buffer per array: 3 arrays x 2 buffers x 2 MiB = 12 MiB,
# safe on every generation's default scoped VMEM (v5e 16 MiB, v6e/v7x 32 MiB).
_TILE_BYTES = 2 * 1024 * 1024
# Lane-tile cap for the ragged path when the (non-128-divisible) last dim is huge.
_MAX_BLOCK_COLS = 4096


def _round_up(x, m):
    return ((x + m - 1) // m) * m


def _block_dims(rows, cols, itemsize):
    """Pick (block_rows, block_cols) for a (rows, cols) slab.

    Guarantees legality (dims are multiples of (8, 128) or full-extent) and,
    whenever rows >= 16, at least 2 row-grid steps so both v7x TensorCores run.
    """
    # Column (lane) block: full extent when it fits, else a 128-multiple tile
    # (ragged boundary block is masked by Pallas).
    block_cols = cols if cols <= _MAX_BLOCK_COLS else _MAX_BLOCK_COLS
    # VMEM footprint is on the padded (8,128) vreg layout, not the logical shape.
    padded_cols = _round_up(block_cols, _LANES)
    budget_rows = max(8, (_TILE_BYTES // itemsize) // padded_cols)
    budget_rows = (budget_rows // 8) * 8
    if rows > 2 * budget_rows:
        block_rows = budget_rows                        # big tensors: ~2 MiB tiles
    elif rows >= 16:
        block_rows = _round_up(pl.cdiv(rows, 2), 8)     # >= 2 steps (megacore)
    else:
        block_rows = rows                               # full extent (always legal)
    return block_rows, block_cols


def _quant_add_kernel(x1_ref, x2_ref, o_ref, *, scale, inv_scale):
    # Fake-quantize both inputs with the shared per-tensor scale, dequant each,
    # then add — mirrors fq(x1) + fq(x2) of the module.
    q1 = jnp.clip(jnp.round(x1_ref[...] * scale), _QMIN, _QMAX)
    q2 = jnp.clip(jnp.round(x2_ref[...] * scale), _QMIN, _QMAX)
    o_ref[...] = q1 * inv_scale + q2 * inv_scale


def quant_add(x1, x2, amax, *, donate_x1=False):
    """Fake-quantize both inputs with a shared (static) per-tensor amax, then add.

    x1, x2: float arrays of identical shape (e.g. NCHW feature maps).
    amax:   concrete calibrated absolute-max (python float / 0-d array).
    donate_x1: alias the output onto x1's buffer (only if x1 is dead afterwards).
    """
    assert x1.shape == x2.shape, "QuantAdd requires equal shapes (no broadcasting)"
    assert x1.dtype == x2.dtype
    orig_shape = x1.shape
    n_elem = x1.size
    if n_elem == 0:
        return x1 + x2

    # amax is a static calibrated constant -> bake scales into the kernel.
    amax_f = float(amax)
    scale = _BOUND / amax_f
    inv_scale = 1.0 / scale

    # Free (contiguous) 2-D view — no pad / slice / concat HBM round-trips.
    if n_elem % _LANES == 0:
        rows, cols = n_elem // _LANES, _LANES          # lane-dense fast path
    elif x1.ndim >= 2:
        cols = orig_shape[-1]
        rows = n_elem // cols                          # keep last dim, mask lanes
    else:
        rows, cols = 1, n_elem                         # 0-d / 1-d ragged fallback
    x1v = x1.reshape(rows, cols)
    x2v = x2.reshape(rows, cols)

    block_rows, block_cols = _block_dims(rows, cols, x1.dtype.itemsize)
    grid = (pl.cdiv(rows, block_rows), pl.cdiv(cols, block_cols))

    kernel = functools.partial(_quant_add_kernel, scale=scale, inv_scale=inv_scale)
    io_alias = {0: 0} if donate_x1 else {}

    out = pl.pallas_call(
        kernel,
        out_shape=jax.ShapeDtypeStruct((rows, cols), x1.dtype),
        grid=grid,
        in_specs=[
            pl.BlockSpec((block_rows, block_cols), lambda i, j: (i, j)),  # x1 tile
            pl.BlockSpec((block_rows, block_cols), lambda i, j: (i, j)),  # x2 tile
        ],
        out_specs=pl.BlockSpec((block_rows, block_cols), lambda i, j: (i, j)),
        input_output_aliases=io_alias,
        compiler_params=pltpu.CompilerParams(
            dimension_semantics=("parallel", "parallel"),
            # 12 MiB double-buffered working set + headroom; within every
            # generation's physical VMEM (incl. v7x 64 MiB).
            vmem_limit_bytes=32 * 1024 * 1024,
        ),
    )(x1v, x2v)

    return out.reshape(orig_shape)


def _reference(x1, x2, amax):
    # pytorch_quantization fake-quant reference: q / scale per input, then add.
    scale = _BOUND / amax
    fq = lambda x: jnp.clip(jnp.round(x * scale), _QMIN, _QMAX) / scale
    return fq(x1) + fq(x2)


if __name__ == "__main__":
    key = jax.random.PRNGKey(0)
    k1, k2, k3, k4 = jax.random.split(key, 4)

    # Deterministic "calibrated" amax parameter (stands in for histogram calib).
    amax = 3.0

    # NCHW conv feature maps (lane-dense fast path: element count % 128 == 0).
    x1 = jax.random.normal(k1, (2, 4, 16, 16), dtype=jnp.float32)
    x2 = jax.random.normal(k2, (2, 4, 16, 16), dtype=jnp.float32)
    out = quant_add(x1, x2, amax)
    jax.block_until_ready(out)
    ref = _reference(x1, x2, jnp.float32(amax))
    assert out.shape == x1.shape and out.dtype == jnp.float32
    assert jnp.max(jnp.abs(out - ref)) < 1e-5, "mismatch vs reference (aligned shape)"

    # Ragged shape (exercises the no-pad masked-lane path).
    y1 = jax.random.normal(k3, (2, 3, 5, 7), dtype=jnp.float32)
    y2 = jax.random.normal(k4, (2, 3, 5, 7), dtype=jnp.float32)
    out2 = quant_add(y1, y2, amax)
    jax.block_until_ready(out2)
    ref2 = _reference(y1, y2, jnp.float32(amax))
    assert out2.shape == y1.shape and out2.dtype == jnp.float32
    assert jnp.max(jnp.abs(out2 - ref2)) < 1e-5, "mismatch vs reference (ragged shape)"

    print("KERNEL_OK")
</pallas_src>

<mosaic_0001>
module attributes {stable_mosaic.version = 11 : i64} {
  func.func @_quant_add_kernel(%arg0: i32, %arg1: i32, %arg2: memref<8x128xf32, #tpu.memory_space<vmem>>, %arg3: memref<8x128xf32, #tpu.memory_space<vmem>>, %arg4: memref<8x128xf32, #tpu.memory_space<vmem>>) attributes {dimension_semantics = [#tpu.dimension_semantics<parallel>, #tpu.dimension_semantics<parallel>], iteration_bounds = array<i64: 2, 1>, scalar_prefetch = 0 : i64, scratch_operands = 0 : i64, tpu.core_type = #tpu.core_type<tc>, window_params = [{transform_indices = @transform_0, window_bounds = array<i64: 8, 128>}, {transform_indices = @transform_1, window_bounds = array<i64: 8, 128>}, {transform_indices = @transform_2, window_bounds = array<i64: 8, 128>}]} {
    %c0 = arith.constant 0 : index
    %c0_0 = arith.constant 0 : index
    %0 = vector.load %arg2[%c0, %c0_0] : memref<8x128xf32, #tpu.memory_space<vmem>>, vector<8x128xf32>
    %cst = arith.constant 42.3333321 : f32
    %1 = vector.broadcast %cst : f32 to vector<8x128xf32>
    %2 = arith.mulf %0, %1 : vector<8x128xf32>
    %3 = math.roundeven %2 : vector<8x128xf32>
    %cst_1 = arith.constant -1.280000e+02 : f32
    %cst_2 = arith.constant 1.270000e+02 : f32
    %4 = vector.broadcast %cst_1 : f32 to vector<8x128xf32>
    %5 = arith.maximumf %4, %3 : vector<8x128xf32>
    %6 = vector.broadcast %cst_2 : f32 to vector<8x128xf32>
    %7 = arith.minimumf %6, %5 : vector<8x128xf32>
    %c0_3 = arith.constant 0 : index
    %c0_4 = arith.constant 0 : index
    %8 = vector.load %arg3[%c0_3, %c0_4] : memref<8x128xf32, #tpu.memory_space<vmem>>, vector<8x128xf32>
    %cst_5 = arith.constant 42.3333321 : f32
    %9 = vector.broadcast %cst_5 : f32 to vector<8x128xf32>
    %10 = arith.mulf %8, %9 : vector<8x128xf32>
    %11 = math.roundeven %10 : vector<8x128xf32>
    %cst_6 = arith.constant -1.280000e+02 : f32
    %cst_7 = arith.constant 1.270000e+02 : f32
    %12 = vector.broadcast %cst_6 : f32 to vector<8x128xf32>
    %13 = arith.maximumf %12, %11 : vector<8x128xf32>
    %14 = vector.broadcast %cst_7 : f32 to vector<8x128xf32>
    %15 = arith.minimumf %14, %13 : vector<8x128xf32>
    %cst_8 = arith.constant 0.0236220472 : f32
    %16 = vector.broadcast %cst_8 : f32 to vector<8x128xf32>
    %17 = arith.mulf %7, %16 : vector<8x128xf32>
    %cst_9 = arith.constant 0.0236220472 : f32
    %18 = vector.broadcast %cst_9 : f32 to vector<8x128xf32>
    %19 = arith.mulf %15, %18 : vector<8x128xf32>
    %20 = arith.addf %17, %19 : vector<8x128xf32>
    %c0_10 = arith.constant 0 : index
    %c0_11 = arith.constant 0 : index
    %21 = vector.load %arg4[%c0_10, %c0_11] : memref<8x128xf32, #tpu.memory_space<vmem>>, vector<8x128xf32>
    tpu.vector_store %arg4[%c0_10, %c0_11], %20 {strides = array<i32>} : memref<8x128xf32, #tpu.memory_space<vmem>>, vector<8x128xf32>,
    return
  }
  func.func @transform_0(%arg0: i32, %arg1: i32) -> (i32, i32) {
    %c0_i32 = arith.constant 0 : i32
    return %arg0, %arg1 : i32, i32
  }
  func.func @transform_1(%arg0: i32, %arg1: i32) -> (i32, i32) {
    %c0_i32 = arith.constant 0 : i32
    return %arg0, %arg1 : i32, i32
  }
  func.func @transform_2(%arg0: i32, %arg1: i32) -> (i32, i32) {
    %c0_i32 = arith.constant 0 : i32
    return %arg0, %arg1 : i32, i32
  }
}

</mosaic_0001>

<bundles_post_ra>
// kernel: tpu_custom_call.1
= control target key start
LH: loop header
LB: loop body
LE: loop exit
PB: predicated region body
PF: predicated region fallthrough
CT: control target
= control target key end

     0   :  { %7 = vsyncpa [#allocation3], 0  ;;  %s820_s0 = inlined_call_operand.hbm [shape: f32[16,128], index: 0, kind: input, shape index: {}]   ;;  %s821_s1 = inlined_call_operand.hbm [shape: f32[16,128], index: 1, kind: input, shape index: {}]   ;;  %s822_s2 = inlined_call_operand.hbm [shape: f32[16,128], index: 2, kind: output, shape index: {}]  }
   0x1   :  { %9 = vsyncpa [#allocation3 + $0x1], 0 }
   0x2   :  { %10 = vsyncpa [#allocation6], 0 }
   0x3   :  { %12 = vsyncpa [#allocation6 + $0x1], 0 }
   0x4   :  { %13 = vsyncpa [#allocation4], 0 }
   0x5   :  { %15 = vsyncpa [#allocation4 + $0x1], 0  ;;  %s600_s9 = smov 0   ;;  %s602_s10 = smov 0  }
   0x6   :  { %s604_s11 = smov 0   ;;  %s606_s12 = smov 0  }
   0x7   :  { %s608_s13 = smov 0   ;;  %s610_s14 = smov 0  }
   0x8 LB: > { %s349_s15 = sadd.s32 4294967295, %s580_s14   ;;  %s350_s16 = sadd.s32 4294967294, %s580_s14   ;;  %s580_s14 = sphi %s610_s14, %s21_s14   ;;  %s576_s13 = sphi %s608_s13, %s842_s13   ;;  %s572_s12 = sphi %s606_s12, %s841_s12   ;;  %s568_s11 = sphi %s604_s11, %s840_s11   ;;  %s564_s10 = sphi %s602_s10, %s839_s10   ;;  %s560_s9 = sphi %s600_s9, %s838_s9  }
   0x9   : > { %s33_s17 = sadd.s32 1, %s576_s13  ;;  %s42_s18 = sadd.s32 1, %s568_s11 }
   0xa   : > { %p35_p0 = scmp.ge.s32.totalorder %s33_s17, 2  ;;  %p49_p1 = scmp.ne.s32.totalorder %s568_s11, %s564_s10 }
   0xb   : > { %p50_p2 = scmp.eq.s32.totalorder %s580_s14, 0  ;;  %p55_p3 = scmp.ne.s32.totalorder %s564_s10, %s560_s9 }
   0xc   : > { %s844_s17 = smov (%p35_p0, %s33_s17), 0  ;;  %p56_p5 = scmp.eq.s32.totalorder %s349_s15, 0 }
   0xd   : > { %p641_p4 = por %p50_p2, %p49_p1  ;;  %s37_s20 = ssub.s32 %s576_s13, %s844_s17 }
   0xe   : > { %p109_p6 = scmp.eq.s32.totalorder %s349_s15, 1  ;;  %p40_p7 = scmp.eq.s32.totalorder %s37_s20, 0 }
   0xf   : > { %p647_p8 = por %p56_p5, %p55_p3  ;;  %p115_p10 = scmp.eq.s32.totalorder %s350_s16, 1 }
  0x10   : > { %p651_p9 = por %p109_p6, %p49_p1  ;;  %p384_p13 = scmp.lt.s32.totalorder %s580_s14, 2 }
  0x11   : > { %s826_s21 = scalar_select %p647_p8, 1, 0 }
  0x12   : > { %s827_s22 = scalar_select %p651_p9, 1, 0 }
  0x13   : > { %s656_s23 = scalar_select %p40_p7, %s568_s11, %s42_s18  }
  0x14   : > { %p658_p11 = por %p115_p10, %p55_p3  ;;  %s665_s25 = sand.u32 1, %s568_s11  }
  0x15   : > { %s353_s26 = sshll.u32 %s665_s25, 3  ;;  %s354_s27 = sshll.u32 %s576_s13, 7 }
  0x16   : > { %s828_s24 = scalar_select %p658_p11, 1, 0 }
  0x17   : > { %s674_s30 = scalar_lea.hbm %s820_s0, %s354_s27  ;;  %s139_s3 = scalar_lea.vmem [#allocation2], %s353_s26 }
  0x18   : > { %s147_s4 = sshll.u32 %s139_s3, 4  ;;  %p682_p0 = pnand %p384_p13, %p641_p4  ;;  %s678_s4 = int_to_ptr.vmem [resolvable:$true] %s147_s4 }
  0x19   : > { %s136_s6 = scalar_lea.sflag [#allocation3], %s665_s25  ;;  %s434_s7 = scalar_lea.hbm %s674_s30, 128 }
  0x1a   : > { %p435_p3 = scmp.ne.s32.totalorder %s674_s30, %s434_s7  ;;  %p436_p5 = pneg %p682_p0 }
  0x1b   : > { %s439_s16 = scalar_lea.hbm %s820_s0, 256  ;;  %p440_p4 = scmp.lt.u32.totalorder %s674_s30, %s820_s0 }
  0x1c   : > { %p437_p6 = pnand %p436_p5, %p435_p3  ;;  %p441_p10 = scmp.lt.u32.totalorder %s439_s16, %s434_s7 }
  0x1d   : > { %p443_p12 = scmp.lt.u32.totalorder %s434_s7, %s674_s30 }
  0x1e   : > { %p438_p7 = pneg %p437_p6  ;;  %p442_p13 = por %p441_p10, %p440_p4 }
  0x20   : > { %p444_p1 = por %p443_p12, %p442_p13 }
  0x22   : > { %p445_p2 = pnand %p444_p1, %p438_p7 }
  0x24   : > { %448 = shalt.err (!%p445_p2)
}
  0x25   : > { %s449_s20 = scalar_lea.vmem %s678_s4, 128  ;;  %s582_s28 = smov [#allocation2]  }
  0x26   : > { %p450_p3 = scmp.ne.s32.totalorder %s678_s4, %s449_s20  ;;  %s454_s29 = sshll.u32 %s582_s28, 4  ;;  %s455_s29 = int_to_ptr.vmem [resolvable:$false] %s454_s29 }
  0x27   : > { %s456_s3 = scalar_lea.vmem %s455_s29, 256  ;;  %p457_p9 = scmp.lt.s32.totalorder %s678_s4, %s455_s29 }
  0x28   : > { %p452_p6 = pnand %p450_p3, %p436_p5  ;;  %p458_p4 = scmp.lt.s32.totalorder %s456_s3, %s449_s20 }
  0x2a   : > { %p453_p11 = pneg %p452_p6  ;;  %p459_p10 = por %p458_p4, %p457_p9 }
  0x2c   : > { %p460_p12 = pnand %p459_p10, %p453_p11 }
  0x2e   : > { %463 = shalt.err (!%p460_p12)
}
  0x2f   : > { %376 = dma.hbm_to_vmem [thread:$0]  (!%p682_p0), %s674_s30, 128, %s678_s4, %s136_s6  }
  0x30   : > { %p830_p1 = scmp.lt.s32.totalorder %s580_s14, 3  ;;  %p831_p2 = scmp.ge.s32.totalorder %s580_s14, 1 }
  0x31   : > { %s727_s16 = scalar_lea.hbm %s821_s1, %s354_s27  ;;  %s158_s18 = scalar_lea.vmem [#allocation5], %s353_s26 }
  0x32   : > { %p718_p7 = pnand %p831_p2, %p830_p1  ;;  %s166_s19 = sshll.u32 %s158_s18, 4  ;;  %s167_s19 = int_to_ptr.vmem [resolvable:$true] %s166_s19 }
  0x33   : > { %s155_s30 = scalar_lea.sflag [#allocation6], %s665_s25  ;;  %s464_s4 = scalar_lea.hbm %s727_s16, 128 }
  0x34   : > { %s832_s7 = scalar_select %p718_p7, 1, 0 }
  0x35   : > { %p465_p9 = scmp.ne.s32.totalorder %s727_s16, %s464_s4  ;;  %s469_s27 = scalar_lea.hbm %s821_s1, 256 }
  0x36   : > { %p470_p3 = scmp.lt.u32.totalorder %s727_s16, %s821_s1  ;;  %p471_p6 = scmp.lt.u32.totalorder %s469_s27, %s464_s4 }
  0x37   : > { %p467_p11 = pnand %p465_p9, %p436_p5  ;;  %p473_p10 = scmp.lt.u32.totalorder %s464_s4, %s727_s16 }
  0x38   : > { %p472_p4 = por %p471_p6, %p470_p3 }
  0x39   : > { %p468_p13 = pneg %p467_p11 }
  0x3a   : > { %p474_p12 = por %p473_p10, %p472_p4 }
  0x3c   : > { %p475_p1 = pnand %p474_p12, %p468_p13 }
  0x3e   : > { %478 = shalt.err (!%p475_p1)
}
  0x3f   : > { %s479_s25 = scalar_lea.vmem %s167_s19, 128  ;;  %s583_s26 = smov [#allocation5]  }
  0x40   : > { %p480_p2 = scmp.ne.s32.totalorder %s167_s19, %s479_s25  ;;  %s484_s3 = sshll.u32 %s583_s26, 4  ;;  %s485_s3 = int_to_ptr.vmem [resolvable:$false] %s484_s3 }
  0x41   : > { %s486_s8 = scalar_lea.vmem %s485_s3, 256  ;;  %p487_p8 = scmp.lt.s32.totalorder %s167_s19, %s485_s3 }
  0x42   : > { %p482_p9 = pnand %p480_p2, %p436_p5  ;;  %p488_p7 = scmp.lt.s32.totalorder %s486_s8, %s479_s25 }
  0x44   : > { %p483_p11 = pneg %p482_p9  ;;  %p489_p3 = por %p488_p7, %p487_p8 }
  0x46   : > { %p490_p6 = pnand %p489_p3, %p483_p11 }
  0x48   : > { %493 = shalt.err (!%p490_p6)
}
  0x49   : > { %379 = dma.hbm_to_vmem [thread:$0]  (!%p682_p0), %s727_s16, 128, %s167_s19, %s155_s30  }
  0x4a   : > { %p833_p13 = scmp.ne.s32.totalorder %s832_s7, 0 }
  0x4b   : > { %s754_s15 = sand.u32 (!%p833_p13), 1, %s564_s10   ;;  %p834_p5 = scmp.ne.s32.totalorder (!%p833_p13), %s826_s21, 0 }
  0x4c   : > { %175 = sbr.rel (%p833_p13) target bundleno = 113 (0x71), region = 28  ;;  %s358_s18 = sshll.u32 (!%p833_p13), %s754_s15, 3 }
  0x4d   : > { %s178_s4 = scalar_lea.sflag (!%p833_p13), [#allocation3], %s754_s15  ;;  %s181_s6 = scalar_lea.vmem (!%p833_p13), [#allocation2], %s358_s18 }
  0x53   : > { %547 = dma.done.wait (%p834_p5), %s178_s4, 128  }
  0x54   : > { %549 = vsyncadd (%p834_p5), %s178_s4, 4294967168  ;;  %s187_s5 = scalar_lea.sflag [#allocation6], %s754_s15  ;;  %s190_s16 = scalar_lea.vmem [#allocation5], %s358_s18 }
  0x55   : > { %551 = dma.done.wait (%p834_p5), %s187_s5, 128  }
  0x56   : > { %553 = vsyncadd (%p834_p5), %s187_s5, 4294967168  ;;  %v216_v0 = vld [vmem:[%s181_s6] sm:$0xff]  ;;  %v221_v1 = vld [vmem:[%s190_s16] sm:$0xff]  ;;  %s215_s7 = scalar_lea.vmem [#allocation7], %s358_s18  ;;  %s362_s30 = sshll.u32 %s572_s12, 7 }
  0x57   : > { %v217_v2 = vmul.f32 42.333332, %v216_v0  ;;  %v222_v3 = vmul.f32 42.333332, %v221_v1  ;;  %s245_s19 = sshll.u32 %s215_s7, 4  ;;  %s773_s27 = scalar_lea.hbm %s822_s2, %s362_s30  ;;  %s768_s19 = int_to_ptr.vmem [resolvable:$true] %s245_s19 }
  0x58   : > { %s231_s28 = scalar_lea.sflag [#allocation4], %s754_s15  ;;  %s494_s29 = scalar_lea.vmem %s768_s19, 128 }
  0x59   : > { %v365_v4 = vround.rtne.f32 %v217_v2  ;;  %v366_v5 = vround.rtne.f32 %v222_v3  ;;  %p495_p8 = scmp.ne.s32.totalorder %s768_s19, %s494_s29  ;;  %p835_p0 = scmp.ne.s32.totalorder %s827_s22, 0 }
  0x5a   : > { %s584_s12 = smov [#allocation7]  }
  0x5b   : > { %v219_v6 = vmax.f32 %v365_v4, -128.0  ;;  %v224_v7 = vmax.f32 %v366_v5, -128.0  ;;  %p496_p7 = pnand %p495_p8, %p835_p0  ;;  %s498_s25 = sshll.u32 %s584_s12, 4  ;;  %s499_s25 = int_to_ptr.vmem [resolvable:$false] %s498_s25 }
  0x5c   : > { %s500_s26 = scalar_lea.vmem %s499_s25, 256  ;;  %p501_p10 = scmp.lt.s32.totalorder %s768_s19, %s499_s25 }
  0x5d   : > { %v220_v8 = vmin.f32 %v219_v6, 127.0  ;;  %v225_v9 = vmin.f32 %v224_v7, 127.0  ;;  %p497_p4 = pneg %p496_p7  ;;  %p502_p12 = scmp.lt.s32.totalorder %s500_s26, %s494_s29 }
  0x5f   : > { %v226_v10 = vmul.f32 0.023622047, %v220_v8  ;;  %v227_v11 = vmul.f32 0.023622047, %v225_v9  ;;  %p503_p1 = por %p502_p12, %p501_p10 }
  0x61   : > { %v228_v12 = vadd.f32 %v227_v11, %v226_v10  ;;  %p504_p2 = pnand %p503_p1, %p497_p4 }
  0x63   : > { %229 = vst [vmem:[%s215_s7] sm:$0xff] %v228_v12 }
  0x64   : > { %507 = shalt.err (!%p504_p2)
}
  0x65   : > { %s508_s3 = scalar_lea.hbm %s773_s27, 128  ;;  %s512_s18 = scalar_lea.hbm %s822_s2, 256 }
  0x66   : > { %p509_p9 = scmp.ne.s32.totalorder %s773_s27, %s508_s3  ;;  %p513_p6 = scmp.lt.u32.totalorder %s773_s27, %s822_s2 }
  0x67   : > { %p514_p13 = scmp.lt.u32.totalorder %s512_s18, %s508_s3  ;;  %p516_p8 = scmp.lt.u32.totalorder %s508_s3, %s773_s27 }
  0x68   : > { %p510_p11 = pnand %p509_p9, %p835_p0 }
  0x69   : > { %p515_p5 = por %p514_p13, %p513_p6 }
  0x6a   : > { %p511_p3 = pneg %p510_p11 }
  0x6b   : > { %p517_p7 = por %p516_p8, %p515_p5 }
  0x6d   : > { %p518_p4 = pnand %p517_p7, %p511_p3 }
  0x6f   : > { %521 = shalt.err (!%p518_p4)
}
  0x70   : > { %371 = dma.vmem_to_hbm [thread:$0]  (%p835_p0), %s768_s19, 128, %s773_s27, %s231_s28  }
  0x71 PF: > { %s257_s5 = sand.u32 1, %s560_s9   ;;  %p836_p10 = scmp.ne.s32.totalorder %s828_s24, 0 }
  0x72   : > { %p837_p12 = scmp.ge.s32.totalorder %s580_s14, 2  ;;  %s258_s16 = scalar_lea.sflag [#allocation4], %s257_s5 }
  0x74   : > { %p381_p1 = pnand %p837_p12, %p836_p10 }
  0x76   : > { %555 = dma.done.wait (!%p381_p1), %s258_s16, 128  }
  0x77   : > { %557 = vsyncadd (!%p381_p1), %s258_s16, 4294967168  ;;  %s21_s14 = sadd.s32 1, %s580_s14   ;;  %s838_s9 = smov %s564_s10 }
  0x78   : > { %p18_p2 = scmp.ge.s32.totalorder %s21_s14, 4   ;;  %s839_s10 = smov %s568_s11 }
  0x79   : > { %s840_s11 = smov %s656_s23  ;;  %s841_s12 = smov %s576_s13 }
  0x7a   : > { %s842_s13 = smov %s844_s17  ;;  %20 = sbr.rel (!%p18_p2) target bundleno = 8 (0x8), region = 86 }
  0x81   :  { %263 = vsyncpa [#allocation3], 1 }
  0x82   :  { %265 = vsyncpa [#allocation3 + $0x1], 1 }
  0x83   :  { %266 = vsyncpa [#allocation6], 1 }
  0x84   :  { %268 = vsyncpa [#allocation6 + $0x1], 1 }
  0x85   :  { %269 = vsyncpa [#allocation4], 1 }
  0x86   :  { %271 = vsyncpa [#allocation4 + $0x1], 1 }

</bundles_post_ra>
